<compile_context>
chip_gen: v7x
topology: tpu7x:2x2x1
jax: 0.10.0
libtpu: 0.0.40
codegen_flags: <defaults>
</compile_context>

<pallas_src>
import functools

import jax
import jax.numpy as jnp
from jax.experimental import pallas as pl
from jax.experimental.pallas import tpu as pltpu


MARGIN = 0.5

_TARGET_TILE_BYTES = 4 * 1024 * 1024   # f32 working-tile budget per buffer
_MAX_TILE_C = 16 * 1024                # chunk the class axis beyond this many
                                       # lane-padded columns (vocab-scale C)


def _round_up(x, m):
    return ((x + m - 1) // m) * m


def _sublane_multiple(dtype):
    # packed-tile row constraint: 8 for 32-bit, 16 for bf16/fp16, 32 for int8/fp8
    return max(8, 32 // jnp.dtype(dtype).itemsize)


def _logit_margin_kernel(logits_ref, cls_ref, partial_ref, tl_acc, mo_acc, *,
                         tile_b, tile_c, true_b, true_c, margin):
    i = pl.program_id(0)          # batch-row tile (parallel)
    j = pl.program_id(1)          # class chunk   (arbitrary / reduction)
    nj = pl.num_programs(1)

    @pl.when(j == 0)
    def _():
        tl_acc[...] = jnp.zeros_like(tl_acc)
        mo_acc[...] = jnp.full_like(mo_acc, -jnp.inf)

    logits = logits_ref[...].astype(jnp.float32)       # (TB, TC) upcast on VPU
    cls = cls_ref[...]                                  # (TB, 1) int32
    tb, tc = logits.shape

    # global class index of each lane in this chunk; mask padded class columns
    col = jax.lax.broadcasted_iota(jnp.int32, (tb, tc), 1) + j * tile_c
    valid_col = col < true_c
    is_true = (col == cls) & valid_col                  # (TB, TC) bool

    # running true-label logit (masked sum: exactly one hit across all chunks)
    tl_acc[...] += jnp.sum(jnp.where(is_true, logits, 0.0), axis=1, keepdims=True)

    # running max over all *other* classes (true class / padded lanes -> -inf)
    neg_inf = jnp.float32(-jnp.inf)
    chunk_max = jnp.max(jnp.where(is_true | (~valid_col), neg_inf, logits),
                        axis=1, keepdims=True)
    mo_acc[...] = jnp.maximum(mo_acc[...], chunk_max)

    @pl.when(j == nj - 1)
    def _():
        # clamp(true - max_other + margin, min=0)
        per_row = jnp.maximum(tl_acc[...] - mo_acc[...] + jnp.float32(margin), 0.0)
        # mask rows that are only padding of the last batch tile
        row = jax.lax.broadcasted_iota(jnp.int32, (tb, 1), 0) + i * tile_b
        per_row = jnp.where(row < true_b, per_row, 0.0)
        # lane-dense partial-sum block (single unmasked vreg store)
        partial = jnp.sum(per_row)
        partial_ref[...] = jnp.full(partial_ref.shape, partial, dtype=jnp.float32)


def _choose_tiles(batch, num_classes, dtype):
    sub = _sublane_multiple(dtype)
    padded_c = _round_up(num_classes, 128)

    # class chunking for vocab-scale C keeps every generation in the streaming
    # regime with bounded VMEM; small/medium C takes the full row in one block.
    if padded_c <= _MAX_TILE_C:
        tile_c = num_classes                  # full class dim in one block
    else:
        tile_c = _MAX_TILE_C                  # multiple of 128
    padded_tc = _round_up(tile_c, 128)

    rows = _TARGET_TILE_BYTES // (padded_tc * 4)
    rows = max(sub, (int(rows) // sub) * sub)

    if batch <= rows:
        if batch > sub:
            # guarantee >= 2 row tiles so the "parallel" axis can shard across
            # v7x's two TensorCores even for small batches
            tile_b = min(rows, _round_up(pl.cdiv(batch, 2), sub))
        else:
            tile_b = batch                    # single tile == full batch dim
    else:
        tile_b = rows
    return tile_b, tile_c


def logit_margin_loss(negative_logits, original_class, *, margin=MARGIN,
                      reduction="mean", tile_rows=None, tile_cols=None):
    """negative_logits: (B, C) float, original_class: (B,) int -> scalar f32."""
    # TODO(synk): reduction='none' (per-row output) is not wired up; only
    #             'mean' (the module default) and 'sum' are implemented here.
    assert reduction in ("mean", "sum")

    batch, num_classes = negative_logits.shape
    itemsize = jnp.dtype(negative_logits.dtype).itemsize
    cls2d = original_class.reshape(batch, 1).astype(jnp.int32)

    auto_tb, auto_tc = _choose_tiles(batch, num_classes, negative_logits.dtype)
    tb = tile_rows if tile_rows is not None else auto_tb
    tc = min(tile_cols if tile_cols is not None else auto_tc, num_classes)
    num_row_tiles = pl.cdiv(batch, tb)
    num_cls_chunks = pl.cdiv(num_classes, tc)

    kernel = functools.partial(
        _logit_margin_kernel, tile_b=tb, tile_c=tc, true_b=batch,
        true_c=num_classes, margin=float(margin))

    # VMEM: 2x double-buffered logits + class tiles, ~3 live f32 temporaries in
    # the elementwise chain, two (tb,1) accumulators, plus a few MiB of slack.
    padded_tc = _round_up(tc, 128)
    in_tile = tb * padded_tc * itemsize
    cls_tile = _round_up(tb, 8) * 128 * 4
    f32_tile = tb * padded_tc * 4
    acc_tile = _round_up(tb, 8) * 128 * 4
    vmem_limit = 2 * (in_tile + cls_tile) + 3 * f32_tile + 2 * acc_tile + (4 << 20)
    vmem_limit = min(int(vmem_limit), 56 * 1024 * 1024)  # headroom in v7x's 64 MiB

    partials = pl.pallas_call(
        kernel,
        out_shape=jax.ShapeDtypeStruct((num_row_tiles, 8, 128), jnp.float32),
        grid=(num_row_tiles, num_cls_chunks),
        in_specs=[
            pl.BlockSpec((tb, tc), lambda i, j: (i, j)),
            pl.BlockSpec((tb, 1), lambda i, j: (i, 0)),
        ],
        out_specs=pl.BlockSpec((1, 8, 128), lambda i, j: (i, 0, 0)),
        scratch_shapes=[
            pltpu.VMEM((tb, 1), jnp.float32),   # running true-label logit
            pltpu.VMEM((tb, 1), jnp.float32),   # running max over other classes
        ],
        compiler_params=pltpu.CompilerParams(
            dimension_semantics=("parallel", "arbitrary"),
            vmem_limit_bytes=int(vmem_limit),
        ),
        cost_estimate=pl.CostEstimate(
            flops=5 * batch * num_classes,
            transcendentals=0,
            bytes_accessed=batch * num_classes * itemsize
                           + batch * 4
                           + num_row_tiles * 8 * 128 * 4,
        ),
    )(negative_logits, cls2d)

    total = jnp.sum(partials[:, 0, 0])
    if reduction == "mean":
        return total / jnp.float32(batch)
    return total
    # TODO(synk): small-C (<128) batch-on-lanes layout variant for full lane
    #             density is not implemented; tiny C pads lanes to 128.


def _reference(negative_logits, original_class, margin=MARGIN, reduction="mean"):
    negative_logits = negative_logits.astype(jnp.float32)
    b, c = negative_logits.shape
    true_logit = jnp.take_along_axis(
        negative_logits, original_class.reshape(-1, 1), axis=1)[:, 0]
    col = jnp.arange(c)[None, :]
    masked = jnp.where(col == original_class.reshape(-1, 1), -jnp.inf, negative_logits)
    max_other = jnp.max(masked, axis=1)
    loss = jnp.maximum(true_logit - max_other + margin, 0.0)
    if reduction == "mean":
        return jnp.mean(loss)
    return jnp.sum(loss)


if __name__ == "__main__":
    key = jax.random.PRNGKey(0)
    k1, k2, k3, k4, k5, k6, k7, k8 = jax.random.split(key, 8)

    # 1) small case (single-chunk class axis), mean and sum reductions
    B, C = 8, 16
    logits = jax.random.normal(k1, (B, C), dtype=jnp.float32)
    cls = jax.random.randint(k2, (B,), 0, C, dtype=jnp.int32)
    out = jax.block_until_ready(logit_margin_loss(logits, cls))
    ref = _reference(logits, cls)
    assert jnp.allclose(out, ref, atol=1e-5, rtol=1e-5), (out, ref)
    out_s = jax.block_until_ready(logit_margin_loss(logits, cls, reduction="sum"))
    ref_s = _reference(logits, cls, reduction="sum")
    assert jnp.allclose(out_s, ref_s, atol=1e-5, rtol=1e-5), (out_s, ref_s)

    # 2) multi row-tile with padded remainder rows (B=20 not a multiple of 8)
    B2, C2 = 20, 16
    logits2 = jax.random.normal(k3, (B2, C2), dtype=jnp.float32)
    cls2 = jax.random.randint(k4, (B2,), 0, C2, dtype=jnp.int32)
    out2 = jax.block_until_ready(logit_margin_loss(logits2, cls2, tile_rows=8))
    ref2 = _reference(logits2, cls2)
    assert jnp.allclose(out2, ref2, atol=1e-5, rtol=1e-5), (out2, ref2)

    # 3) class-chunked path with a partial last chunk (C=200, chunk=128)
    B3, C3 = 16, 200
    logits3 = jax.random.normal(k5, (B3, C3), dtype=jnp.float32)
    cls3 = jax.random.randint(k6, (B3,), 0, C3, dtype=jnp.int32)
    out3 = jax.block_until_ready(
        logit_margin_loss(logits3, cls3, tile_rows=8, tile_cols=128))
    ref3 = _reference(logits3, cls3)
    assert jnp.allclose(out3, ref3, atol=1e-5, rtol=1e-5), (out3, ref3)

    # 4) bf16 inputs: dtype-aware sublane rounding (16-row tiles), native DMA
    B4, C4 = 48, 64
    logits4 = jax.random.normal(k7, (B4, C4), dtype=jnp.float32).astype(jnp.bfloat16)
    cls4 = jax.random.randint(k8, (B4,), 0, C4, dtype=jnp.int32)
    out4 = jax.block_until_ready(logit_margin_loss(logits4, cls4))
    ref4 = _reference(logits4.astype(jnp.float32), cls4)
    assert jnp.allclose(out4, ref4, atol=1e-5, rtol=1e-5), (out4, ref4)

    print("KERNEL_OK")
</pallas_src>

<mosaic_0001>
module attributes {stable_mosaic.version = 11 : i64} {
  func.func @_logit_margin_kernel(%arg0: i32, %arg1: i32, %arg2: memref<8x16xf32, #tpu.memory_space<vmem>>, %arg3: memref<8x1xi32, #tpu.memory_space<vmem>>, %arg4: memref<1x8x128xf32, #tpu.memory_space<vmem>>, %arg5: memref<8x1xf32, #tpu.memory_space<vmem>>, %arg6: memref<8x1xf32, #tpu.memory_space<vmem>>) attributes {dimension_semantics = [#tpu.dimension_semantics<parallel>, #tpu.dimension_semantics<arbitrary>], iteration_bounds = array<i64: 1, 1>, scalar_prefetch = 0 : i64, scratch_operands = 2 : i64, tpu.core_type = #tpu.core_type<tc>, window_params = [{transform_indices = @transform_0, window_bounds = array<i64: 8, 16>}, {transform_indices = @transform_1, window_bounds = array<i64: 8, 1>}, {transform_indices = @transform_2, window_bounds = array<i64: 1, 8, 128>}]} {
    %c0_i32 = arith.constant 0 : i32
    %0 = arith.cmpi eq, %arg1, %c0_i32 : i32
    %1 = arith.extui %0 : i1 to i32
    %c0_i32_0 = arith.constant 0 : i32
    %2 = arith.cmpi ne, %1, %c0_i32_0 : i32
    scf.if %2 {
      %cst_19 = arith.constant 0.000000e+00 : f32
      %33 = vector.broadcast %cst_19 : f32 to vector<8x1xf32>
      %c0_20 = arith.constant 0 : index
      %c0_21 = arith.constant 0 : index
      %34 = vector.load %arg5[%c0_20, %c0_21] : memref<8x1xf32, #tpu.memory_space<vmem>>, vector<8x1xf32>
      tpu.vector_store %arg5[%c0_20, %c0_21], %33 {strides = array<i32>} : memref<8x1xf32, #tpu.memory_space<vmem>>, vector<8x1xf32>,
      %cst_22 = arith.constant 0xFF800000 : f32
      %35 = vector.broadcast %cst_22 : f32 to vector<8x1xf32>
      %c0_23 = arith.constant 0 : index
      %c0_24 = arith.constant 0 : index
      %36 = vector.load %arg6[%c0_23, %c0_24] : memref<8x1xf32, #tpu.memory_space<vmem>>, vector<8x1xf32>
      tpu.vector_store %arg6[%c0_23, %c0_24], %35 {strides = array<i32>} : memref<8x1xf32, #tpu.memory_space<vmem>>, vector<8x1xf32>,
    } else {
    }
    %c0 = arith.constant 0 : index
    %c0_1 = arith.constant 0 : index
    %3 = vector.load %arg2[%c0, %c0_1] : memref<8x16xf32, #tpu.memory_space<vmem>>, vector<8x16xf32>
    %c0_2 = arith.constant 0 : index
    %c0_3 = arith.constant 0 : index
    %4 = vector.load %arg3[%c0_2, %c0_3] : memref<8x1xi32, #tpu.memory_space<vmem>>, vector<8x1xi32>
    %5 = tpu.iota {dimensions = array<i32: 1>} : vector<8x16xi32>
    %c16_i32 = arith.constant 16 : i32
    %6 = arith.muli %arg1, %c16_i32 : i32
    %7 = vector.broadcast %6 : i32 to vector<8x16xi32>
    %8 = arith.addi %5, %7 : vector<8x16xi32>
    %c16_i32_4 = arith.constant 16 : i32
    %9 = vector.broadcast %c16_i32_4 : i32 to vector<8x16xi32>
    %10 = arith.cmpi slt, %8, %9 : vector<8x16xi32>
    %11 = vector.broadcast %4 : vector<8x1xi32> to vector<8x16xi32>
    %12 = arith.cmpi eq, %8, %11 : vector<8x16xi32>
    %13 = arith.andi %12, %10 : vector<8x16xi1>
    %c0_5 = arith.constant 0 : index
    %c0_6 = arith.constant 0 : index
    %14 = vector.load %arg5[%c0_5, %c0_6] : memref<8x1xf32, #tpu.memory_space<vmem>>, vector<8x1xf32>
    %cst = arith.constant 0.000000e+00 : f32
    %15 = vector.broadcast %cst : f32 to vector<8x16xf32>
    %16 = arith.select %13, %3, %15 : vector<8x16xi1>, vector<8x16xf32>
    %cst_7 = arith.constant dense<0.000000e+00> : vector<8xf32>
    %17 = vector.multi_reduction <add>, %16, %cst_7 [1] : vector<8x16xf32> to vector<8xf32>
    %18 = vector.shape_cast %17 : vector<8xf32> to vector<8x1xf32>
    %19 = arith.addf %14, %18 : vector<8x1xf32>
    %c0_8 = arith.constant 0 : index
    %c0_9 = arith.constant 0 : index
    %20 = vector.load %arg5[%c0_8, %c0_9] : memref<8x1xf32, #tpu.memory_space<vmem>>, vector<8x1xf32>
    tpu.vector_store %arg5[%c0_8, %c0_9], %19 {strides = array<i32>} : memref<8x1xf32, #tpu.memory_space<vmem>>, vector<8x1xf32>,
    %cst_10 = arith.constant dense<true> : vector<8x16xi1>
    %21 = arith.xori %10, %cst_10 : vector<8x16xi1>
    %22 = arith.ori %13, %21 : vector<8x16xi1>
    %cst_11 = arith.constant 0xFF800000 : f32
    %23 = vector.broadcast %cst_11 : f32 to vector<8x16xf32>
    %24 = arith.select %22, %23, %3 : vector<8x16xi1>, vector<8x16xf32>
    %cst_12 = arith.constant dense<0xFF800000> : vector<8xf32>
    %25 = vector.multi_reduction <maximumf>, %24, %cst_12 [1] : vector<8x16xf32> to vector<8xf32>
    %26 = vector.shape_cast %25 : vector<8xf32> to vector<8x1xf32>
    %c0_13 = arith.constant 0 : index
    %c0_14 = arith.constant 0 : index
    %27 = vector.load %arg6[%c0_13, %c0_14] : memref<8x1xf32, #tpu.memory_space<vmem>>, vector<8x1xf32>
    %28 = arith.maximumf %27, %26 : vector<8x1xf32>
    %c0_15 = arith.constant 0 : index
    %c0_16 = arith.constant 0 : index
    %29 = vector.load %arg6[%c0_15, %c0_16] : memref<8x1xf32, #tpu.memory_space<vmem>>, vector<8x1xf32>
    tpu.vector_store %arg6[%c0_15, %c0_16], %28 {strides = array<i32>} : memref<8x1xf32, #tpu.memory_space<vmem>>, vector<8x1xf32>,
    %c0_i32_17 = arith.constant 0 : i32
    %30 = arith.cmpi eq, %arg1, %c0_i32_17 : i32
    %31 = arith.extui %30 : i1 to i32
    %c0_i32_18 = arith.constant 0 : i32
    %32 = arith.cmpi ne, %31, %c0_i32_18 : i32
    scf.if %32 {
      %c0_19 = arith.constant 0 : index
      %c0_20 = arith.constant 0 : index
      %33 = vector.load %arg5[%c0_19, %c0_20] : memref<8x1xf32, #tpu.memory_space<vmem>>, vector<8x1xf32>
      %c0_21 = arith.constant 0 : index
      %c0_22 = arith.constant 0 : index
      %34 = vector.load %arg6[%c0_21, %c0_22] : memref<8x1xf32, #tpu.memory_space<vmem>>, vector<8x1xf32>
      %35 = arith.subf %33, %34 : vector<8x1xf32>
      %cst_23 = arith.constant 5.000000e-01 : f32
      %36 = vector.broadcast %cst_23 : f32 to vector<8x1xf32>
      %37 = arith.addf %35, %36 : vector<8x1xf32>
      %cst_24 = arith.constant 0.000000e+00 : f32
      %38 = vector.broadcast %cst_24 : f32 to vector<8x1xf32>
      %39 = arith.maximumf %37, %38 : vector<8x1xf32>
      %40 = tpu.iota {dimensions = array<i32: 0>} : vector<8x1xi32>
      %c8_i32 = arith.constant 8 : i32
      %41 = arith.muli %arg0, %c8_i32 : i32
      %42 = vector.broadcast %41 : i32 to vector<8x1xi32>
      %43 = arith.addi %40, %42 : vector<8x1xi32>
      %c8_i32_25 = arith.constant 8 : i32
      %44 = vector.broadcast %c8_i32_25 : i32 to vector<8x1xi32>
      %45 = arith.cmpi slt, %43, %44 : vector<8x1xi32>
      %cst_26 = arith.constant 0.000000e+00 : f32
      %46 = vector.broadcast %cst_26 : f32 to vector<8x1xf32>
      %47 = arith.select %45, %39, %46 : vector<8x1xi1>, vector<8x1xf32>
      %48 = vector.shape_cast %47 : vector<8x1xf32> to vector<1x8x1xf32>
      %cst_27 = arith.constant dense<0.000000e+00> : vector<1xf32>
      %49 = vector.multi_reduction <add>, %48, %cst_27 [1, 2] : vector<1x8x1xf32> to vector<1xf32>
      %50 = vector.shape_cast %49 : vector<1xf32> to vector<1x1x1xf32>
      %51 = vector.extract %50[0, 0, 0] : f32 from vector<1x1x1xf32>
      %52 = vector.broadcast %51 : f32 to vector<1x8x128xf32>
      %c0_28 = arith.constant 0 : index
      %c0_29 = arith.constant 0 : index
      %c0_30 = arith.constant 0 : index
      %53 = vector.load %arg4[%c0_28, %c0_29, %c0_30] : memref<1x8x128xf32, #tpu.memory_space<vmem>>, vector<1x8x128xf32>
      tpu.vector_store %arg4[%c0_28, %c0_29, %c0_30], %52 {strides = array<i32>} : memref<1x8x128xf32, #tpu.memory_space<vmem>>, vector<1x8x128xf32>,
    } else {
    }
    return
  }
  func.func @transform_0(%arg0: i32, %arg1: i32) -> (i32, i32) {
    %c0_i32 = arith.constant 0 : i32
    return %arg0, %arg1 : i32, i32
  }
  func.func @transform_1(%arg0: i32, %arg1: i32) -> (i32, i32) {
    %c0_i32 = arith.constant 0 : i32
    %c0_i32_0 = arith.constant 0 : i32
    return %arg0, %c0_i32 : i32, i32
  }
  func.func @transform_2(%arg0: i32, %arg1: i32) -> (i32, i32, i32) {
    %c0_i32 = arith.constant 0 : i32
    %c0_i32_0 = arith.constant 0 : i32
    %c0_i32_1 = arith.constant 0 : i32
    return %arg0, %c0_i32, %c0_i32_0 : i32, i32, i32
  }
}

</mosaic_0001>

<bundles_post_ra>
// kernel: tpu_custom_call.1
= control target key start
LH: loop header
LB: loop body
LE: loop exit
PB: predicated region body
PF: predicated region fallthrough
CT: control target
= control target key end

     0   :  { %s166_s0 = inlined_call_operand.vmem [shape: f32[8,16], index: 0, kind: input, shape index: {}]   ;;  %s167_s1 = inlined_call_operand.vmem [shape: s32[8,1], index: 1, kind: input, shape index: {}]   ;;  %s168_s2 = inlined_call_operand.hbm [shape: f32[1,8,128], index: 2, kind: output, shape index: {}]  }
   0x1   :  { %v20_v0 = vld [vmem:[%s167_s1] sm:$0xff] }
   0x2   :  { %7 = vsyncpa [#allocation5], 0  ;;  %v123_v1 = vmov 0   ;;  %v21_v2 = vlaneseq  ;;  %v19_v5 = vld [vmem:[%s166_s0] sm:$0xff]  ;;  %vm124_vm1 = vmmov 1   ;;  %vm34_vm4 = vcmask 130048  }
   0x3   :  { %98 = vset.pattern.permute.xlu0 %v123_v1  ;;  %vm16_vm7 = vcmask 7168   ;;  %v125_v10 = vmov 0.0   ;;  %v126_v11 = vmov -inf   ;;  %s127_s0 = smov [#allocation4]  }
   0x4   :  { %28 = vperm.xlu0 %98, %v20_v0   ;;  %v22_v3 = vand.u32 127, %v21_v2  ;;  %17 = vst.msk [vmem:[#allocation2] sm:$0xff] %vm16_vm7, %v125_v10  ;;  %18 = vst.msk [vmem:[#allocation3] sm:$0xff] %vm16_vm7, %v126_v11  ;;  %s83_s1 = sshll.u32 %s127_s0, 4  ;;  %s84_s1 = int_to_ptr.vmem [resolvable:$true] %s83_s1 }
   0x5   :  { %s99_s14 = scalar_lea.vmem %s84_s1, 128  ;;  %p104_p1 = scmp.lt.s32.totalorder %s84_s1, %s84_s1 }
   0x6   :  { %vm26_vm0 = vcmp.lt.s32.totalorder %v22_v3, 16  ;;  %p100_p0 = scmp.ne.s32.totalorder %s84_s1, %s99_s14  ;;  %p105_p2 = scmp.lt.s32.totalorder %s99_s14, %s99_s14 }
   0x7   :  { %vm41_vm2 = vmxor %vm26_vm0, %vm124_vm1 }
   0x8   :  { %p106_p3 = por %p105_p2, %p104_p1 }
   0xa   :  { %p107_p4 = pnand %p106_p3, %p100_p0 }
   0xb   :  { %v32_v12 = vld [vmem:[#allocation2] sm:$0xff]  ;;  %v47_v13 = vld [vmem:[#allocation3] sm:$0xff] }
  0x83   :  { %v29_v4 = vpop.permute.xlu0 %28 }
  0x84   :  { %vm30_vm3 = vcmp.eq.s32.totalorder %v22_v3, %v29_v4 }
  0x85   :  { %vm31_vm5 = vmand %vm30_vm3, %vm26_vm0 }
  0x86   :  { %v33_v6 = vsel %vm31_vm5, %v19_v5, 0.0  ;;  %vm42_vm6 = vmor %vm31_vm5, %vm41_vm2 }
  0x87   :  { %v35_v7 = vsel %vm34_vm4, %v33_v6, 0.0  ;;  %v43_v8 = vsel %vm42_vm6, -inf, %v19_v5 }
  0x88   :  { %36 = vadd.xlane.f32.xlu0 %v35_v7  ;;  %v44_v9 = vsel %vm34_vm4, %v43_v8, -inf }
  0x89   :  { %45 = vmax.xlane.f32.xlu1 %v44_v9 }
 0x115   :  { %v37_v14 = vpop.xlane.xlu0 %36 }
 0x116   :  { %v38_v15 = vadd.f32 %v37_v14, %v32_v12  ;;  %v46_v16 = vpop.xlane.xlu1 %45 }
 0x117   :  { %v48_v17 = vmax.f32 %v47_v13, %v46_v16 }
 0x118   :  { %40 = vst.msk [vmem:[#allocation2] sm:$0xff] %vm16_vm7, %v38_v15 }
 0x119   :  { %49 = vst.msk [vmem:[#allocation3] sm:$0xff] %vm16_vm7, %v48_v17 }
 0x11f   :  { %v53_v18 = vld [vmem:[#allocation2] sm:$0xff] }
 0x120   :  { %v54_v19 = vld [vmem:[#allocation3] sm:$0xff] }
 0x121   :  { %v55_v20 = vsub.f32 %v53_v18, %v54_v19 }
 0x123   :  { %v56_v21 = vadd.f32 0.5, %v55_v20 }
 0x125   :  { %v57_v22 = vmax.f32 %v56_v21, 0.0 }
 0x127   :  { %v65_v23 = vsel %vm16_vm7, %v57_v22, 0.0 }
 0x128   :  { %66 = vadd.xlane.f32.xlu1 %v65_v23 }
 0x1b5   :  { %v67_v24 = vpop.xlane.xlu1 %66 }
 0x1b6   :  { %v68_v25 = vrot.slane %v67_v24, 4 }
 0x1b8   :  { %v69_v26 = vadd.f32 %v68_v25, %v67_v24 }
 0x1ba   :  { %v70_v27 = vrot.slane %v69_v26, 2 }
 0x1bc   :  { %v71_v28 = vadd.f32 %v70_v27, %v69_v26 }
 0x1be   :  { %v72_v29 = vrot.slane %v71_v28, 1 }
 0x1c0   :  { %v73_v30 = vadd.f32 %v72_v29, %v71_v28 }
 0x1c2   :  { %91 = vpush %v73_v30 }
 0x1f3   :  { %s92_s13 = spop %91 }
 0x1f4   :  { %v75_v31 = vstv %s92_s13 }
 0x1f5   :  { %76 = vst [vmem:[#allocation4] sm:$0xff] %v75_v31 }
 0x1f6   :  { %110 = shalt.err (!%p107_p4)
}
 0x1f7   :  { %s111_s17 = scalar_lea.hbm %s168_s2, 128 }
 0x1f8   :  { %p112_p5 = scmp.ne.s32.totalorder %s168_s2, %s111_s17  ;;  %p115_p6 = scmp.lt.u32.totalorder %s111_s17, %s168_s2 }
 0x1fa   :  { %p117_p7 = pnand %p115_p6, %p112_p5 }
 0x1fc   :  { %120 = shalt.err (!%p117_p7)
}
 0x1fd   :  { %86 = dma.vmem_to_hbm [thread:$0]  %s84_s1, 128, %s168_s2, [#allocation5]  }
 0x1fe   :  { %121 = dma.done.wait [#allocation5], 128  }
 0x1ff   :  { %122 = vsyncadd [#allocation5], 4294967168 }
 0x200   :  { %90 = vsyncpa [#allocation5], 1 }

</bundles_post_ra>
